<compile_context>
chip_gen: v7x
topology: tpu7x:2x2x1
jax: 0.10.0
libtpu: 0.0.40
codegen_flags: <defaults>
</compile_context>

<pallas_src>
import jax
import jax.numpy as jnp
from jax.experimental import pallas as pl
from jax.experimental.pallas import tpu as pltpu


def _round_up(v, m):
    return ((v + m - 1) // m) * m


def ffn_kernel(x_ref, w1_ref, b1_ref, w2_ref, b2_ref, o_ref, acc_ref):
    """One (row_tile x d) token block, one h_tile slice of the hidden dim."""
    h_idx = pl.program_id(1)

    @pl.when(h_idx == 0)
    def _init():
        acc_ref[...] = jnp.zeros_like(acc_ref)

    # layer_1 partial: (row_tile, d) @ (d, h_tile) -> f32, bias added in f32.
    h = jnp.dot(x_ref[...], w1_ref[...], preferred_element_type=jnp.float32)
    h = h + b1_ref[...]
    # NOTE: the reference module is Linear -> Linear -> Dropout (no activation).
    h = h.astype(w2_ref.dtype)  # back to MXU compute dtype (bf16 on v6e/v7x)

    # layer_2 partial, accumulated over the hidden-dim grid axis in f32.
    acc_ref[...] += jnp.dot(h, w2_ref[...], preferred_element_type=jnp.float32)

    @pl.when(h_idx == pl.num_programs(1) - 1)
    def _finalize():
        # Dropout is identity in eval mode.
        # TODO(synk): training-mode dropout (pltpu.prng_seed + stateful_bernoulli).
        o_ref[...] = (acc_ref[...] + b2_ref[...]).astype(o_ref.dtype)


def ffn_pallas(x, w1_t, b1, w2_t, b2, *, row_tile=256, h_tile=1024,
               compute_dtype=jnp.bfloat16):
    """x: [..., d_model] -> [..., d_model]. Two fused linear layers in one kernel.

    Weights are pre-transposed: w1_t [d_model, hsize], w2_t [hsize, d_model].
    Rows and feature axes are zero-padded to 128-aligned, MXU-sized tiles and
    the padding is sliced off before returning.
    """
    orig_shape = x.shape
    orig_dtype = x.dtype
    d_model = x.shape[-1]
    hsize = w1_t.shape[-1]

    x2d = x.reshape(-1, d_model)
    n = x2d.shape[0]

    # Lane-align feature axes (multiples of 128) and pick MXU-aligned tiles.
    d_pad = _round_up(d_model, 128)
    h_pad = _round_up(hsize, 128)
    row_tile = _round_up(min(row_tile, _round_up(n, 128)), 128)
    h_tile = _round_up(min(h_tile, h_pad), 128)
    h_pad = _round_up(h_pad, h_tile)
    n_pad = _round_up(n, row_tile)

    # Zero-pad: padded hidden units get zero weight AND zero bias so they
    # contribute nothing; padded output features / rows are sliced off below.
    xp = jnp.pad(x2d, ((0, n_pad - n), (0, d_pad - d_model))).astype(compute_dtype)
    w1p = jnp.pad(w1_t, ((0, d_pad - d_model), (0, h_pad - hsize))).astype(compute_dtype)
    w2p = jnp.pad(w2_t, ((0, h_pad - hsize), (0, d_pad - d_model))).astype(compute_dtype)
    b1p = jnp.pad(b1, (0, h_pad - hsize)).astype(jnp.float32).reshape(1, h_pad)
    b2p = jnp.pad(b2, (0, d_pad - d_model)).astype(jnp.float32).reshape(1, d_pad)

    grid = (n_pad // row_tile, h_pad // h_tile)

    cbytes = jnp.dtype(compute_dtype).itemsize
    obytes = jnp.dtype(orig_dtype).itemsize

    # Explicit VMEM budget: double-buffered tiles + f32 accumulator + headroom,
    # capped at 64 MiB so the same config also fits v7x (64 MiB per TC).
    vmem_need = (
        2 * row_tile * d_pad * cbytes        # x tiles
        + 2 * d_pad * h_tile * cbytes        # W1^T tiles
        + 2 * h_tile * 4                     # b1 tiles (f32)
        + 2 * h_tile * d_pad * cbytes        # W2^T tiles
        + 2 * d_pad * 4                      # b2
        + 2 * row_tile * d_pad * obytes      # out tiles
        + row_tile * d_pad * 4               # f32 accumulator scratch
    )
    vmem_limit = int(min(max(vmem_need * 3 // 2 + (2 << 20), 32 << 20), 64 << 20))

    num_row_blocks = n_pad // row_tile
    cost = pl.CostEstimate(
        flops=4 * n_pad * d_pad * h_pad,  # two matmuls, 2*M*K*N each
        transcendentals=0,
        bytes_accessed=(n_pad * d_pad * (cbytes + obytes)              # x + out
                        + num_row_blocks * 2 * d_pad * h_pad * cbytes  # weights
                        + (h_pad + d_pad) * 4),                        # biases
    )

    out = pl.pallas_call(
        ffn_kernel,
        out_shape=jax.ShapeDtypeStruct((n_pad, d_pad), orig_dtype),
        grid_spec=pltpu.PrefetchScalarGridSpec(
            num_scalar_prefetch=0,
            grid=grid,
            in_specs=[
                pl.BlockSpec((row_tile, d_pad), lambda i, h: (i, 0)),  # x rows
                pl.BlockSpec((d_pad, h_tile), lambda i, h: (0, h)),    # W1^T slice
                pl.BlockSpec((1, h_tile), lambda i, h: (0, h)),        # b1 slice
                pl.BlockSpec((h_tile, d_pad), lambda i, h: (h, 0)),    # W2^T slice
                pl.BlockSpec((1, d_pad), lambda i, h: (0, 0)),         # b2
            ],
            out_specs=pl.BlockSpec((row_tile, d_pad), lambda i, h: (i, 0)),
            scratch_shapes=[pltpu.VMEM((row_tile, d_pad), jnp.float32)],
        ),
        compiler_params=pltpu.CompilerParams(
            dimension_semantics=("parallel", "arbitrary"),
            vmem_limit_bytes=vmem_limit,
        ),
        cost_estimate=cost,
    )(xp, w1p, b1p, w2p, b2p)

    return out[:n, :d_model].reshape(orig_shape)


def ffn_reference(x, w1_t, b1, w2_t, b2, compute_dtype=jnp.float32):
    """Pure-JAX reference mirroring the kernel's mixed-precision arithmetic."""
    d_model = x.shape[-1]
    x2 = x.reshape(-1, d_model).astype(compute_dtype)
    h = jnp.dot(x2, w1_t.astype(compute_dtype),
                preferred_element_type=jnp.float32) + b1.astype(jnp.float32)
    h = h.astype(compute_dtype)
    y = jnp.dot(h, w2_t.astype(compute_dtype),
                preferred_element_type=jnp.float32) + b2.astype(jnp.float32)
    return y.reshape(x.shape).astype(x.dtype)


def init_ffn_params(key, d_model, hsize, dtype=jnp.float32):
    """Deterministic init matching nn.Linear's U(-1/sqrt(fan_in), 1/sqrt(fan_in))."""
    k1, k2, k3, k4 = jax.random.split(key, 4)
    bound1 = 1.0 / jnp.sqrt(d_model)
    bound2 = 1.0 / jnp.sqrt(hsize)
    # Stored pre-transposed: [in_features, out_features]
    w1_t = jax.random.uniform(k1, (d_model, hsize), dtype, -bound1, bound1)
    b1 = jax.random.uniform(k2, (hsize,), dtype, -bound1, bound1)
    w2_t = jax.random.uniform(k3, (hsize, d_model), dtype, -bound2, bound2)
    b2 = jax.random.uniform(k4, (d_model,), dtype, -bound2, bound2)
    return w1_t, b1, w2_t, b2


if __name__ == "__main__":
    key = jax.random.PRNGKey(0)

    # --- main check: lane-aligned dims, exercises both grid axes --------------
    d_model, hsize = 128, 256
    batch, seq = 2, 128
    kx, kp = jax.random.split(key)
    x = jax.random.normal(kx, (batch, seq, d_model), jnp.float32)
    w1_t, b1, w2_t, b2 = init_ffn_params(kp, d_model, hsize)

    # f32 path with small tiles to force multi-step H accumulation + 2 row blocks.
    out_f32 = jax.block_until_ready(
        ffn_pallas(x, w1_t, b1, w2_t, b2, row_tile=128, h_tile=128,
                   compute_dtype=jnp.float32))
    ref_f32 = ffn_reference(x, w1_t, b1, w2_t, b2, jnp.float32)
    assert jnp.allclose(out_f32, ref_f32, atol=1e-4, rtol=1e-4), "f32 mismatch"

    # Default perf path: bf16 compute, f32 accumulation, large MXU-aligned tiles.
    out_bf16 = jax.block_until_ready(ffn_pallas(x, w1_t, b1, w2_t, b2))
    ref_bf16 = ffn_reference(x, w1_t, b1, w2_t, b2, jnp.bfloat16)
    assert jnp.allclose(out_bf16, ref_bf16, atol=2e-2, rtol=2e-2), "bf16 mismatch"

    # --- unaligned dims: wrapper pads rows/features to 128 and slices back ----
    d2, h2 = 32, 64
    kx2, kp2 = jax.random.split(kp)
    x2 = jax.random.normal(kx2, (2, 8, d2), jnp.float32)
    p2 = init_ffn_params(kp2, d2, h2)
    out2 = jax.block_until_ready(ffn_pallas(x2, *p2, compute_dtype=jnp.float32))
    ref2 = ffn_reference(x2, *p2, jnp.float32)
    assert jnp.allclose(out2, ref2, atol=1e-4, rtol=1e-4), "padded-path mismatch"

    print("KERNEL_OK")
</pallas_src>

<mosaic_0001>
module attributes {stable_mosaic.version = 11 : i64} {
  func.func @ffn_kernel(%arg0: i32, %arg1: i32, %arg2: memref<128x128xf32, #tpu.memory_space<vmem>>, %arg3: memref<128x128xf32, #tpu.memory_space<vmem>>, %arg4: memref<1x128xf32, #tpu.memory_space<vmem>>, %arg5: memref<128x128xf32, #tpu.memory_space<vmem>>, %arg6: memref<1x128xf32, #tpu.memory_space<vmem>>, %arg7: memref<128x128xf32, #tpu.memory_space<vmem>>, %arg8: memref<128x128xf32, #tpu.memory_space<vmem>>) attributes {dimension_semantics = [#tpu.dimension_semantics<parallel>, #tpu.dimension_semantics<arbitrary>], iteration_bounds = array<i64: 2, 2>, scalar_prefetch = 0 : i64, scratch_operands = 1 : i64, tpu.core_type = #tpu.core_type<tc>, window_params = [{transform_indices = @transform_0, window_bounds = array<i64: 128, 128>}, {transform_indices = @transform_1, window_bounds = array<i64: 128, 128>}, {transform_indices = @transform_2, window_bounds = array<i64: 1, 128>}, {transform_indices = @transform_3, window_bounds = array<i64: 128, 128>}, {pipeline_mode = #tpu.pipeline_mode<synchronous>, transform_indices = @transform_4, window_bounds = array<i64: 1, 128>}, {transform_indices = @transform_5, window_bounds = array<i64: 128, 128>}]} {
    %c0_i32 = arith.constant 0 : i32
    %0 = arith.cmpi eq, %arg1, %c0_i32 : i32
    %1 = arith.extui %0 : i1 to i32
    %c0_i32_0 = arith.constant 0 : i32
    %2 = arith.cmpi ne, %1, %c0_i32_0 : i32
    scf.if %2 {
      %cst_14 = arith.constant 0.000000e+00 : f32
      %17 = vector.broadcast %cst_14 : f32 to vector<128x128xf32>
      %c0_15 = arith.constant 0 : index
      %c0_16 = arith.constant 0 : index
      %18 = vector.load %arg8[%c0_15, %c0_16] : memref<128x128xf32, #tpu.memory_space<vmem>>, vector<128x128xf32>
      tpu.vector_store %arg8[%c0_15, %c0_16], %17 {strides = array<i32>} : memref<128x128xf32, #tpu.memory_space<vmem>>, vector<128x128xf32>,
    } else {
    }
    %c0 = arith.constant 0 : index
    %c0_1 = arith.constant 0 : index
    %3 = vector.load %arg2[%c0, %c0_1] : memref<128x128xf32, #tpu.memory_space<vmem>>, vector<128x128xf32>
    %c0_2 = arith.constant 0 : index
    %c0_3 = arith.constant 0 : index
    %4 = vector.load %arg3[%c0_2, %c0_3] : memref<128x128xf32, #tpu.memory_space<vmem>>, vector<128x128xf32>
    %cst = arith.constant dense<0.000000e+00> : vector<128x128xf32>
    %5 = tpu.matmul %3, %4, %cst {dimension_numbers = #tpu.dot_dimension_numbers<[1], [0], [0], [1], [0, 0, 1, 1], [], []>} : vector<128x128xf32>, vector<128x128xf32>, vector<128x128xf32> -> vector<128x128xf32>
    %c0_4 = arith.constant 0 : index
    %c0_5 = arith.constant 0 : index
    %6 = vector.load %arg4[%c0_4, %c0_5] : memref<1x128xf32, #tpu.memory_space<vmem>>, vector<1x128xf32>
    %7 = vector.broadcast %6 : vector<1x128xf32> to vector<128x128xf32>
    %8 = arith.addf %5, %7 : vector<128x128xf32>
    %c0_6 = arith.constant 0 : index
    %c0_7 = arith.constant 0 : index
    %9 = vector.load %arg8[%c0_6, %c0_7] : memref<128x128xf32, #tpu.memory_space<vmem>>, vector<128x128xf32>
    %c0_8 = arith.constant 0 : index
    %c0_9 = arith.constant 0 : index
    %10 = vector.load %arg5[%c0_8, %c0_9] : memref<128x128xf32, #tpu.memory_space<vmem>>, vector<128x128xf32>
    %cst_10 = arith.constant dense<0.000000e+00> : vector<128x128xf32>
    %11 = tpu.matmul %8, %10, %cst_10 {dimension_numbers = #tpu.dot_dimension_numbers<[1], [0], [0], [1], [0, 0, 1, 1], [], []>} : vector<128x128xf32>, vector<128x128xf32>, vector<128x128xf32> -> vector<128x128xf32>
    %12 = arith.addf %9, %11 : vector<128x128xf32>
    %c0_11 = arith.constant 0 : index
    %c0_12 = arith.constant 0 : index
    %13 = vector.load %arg8[%c0_11, %c0_12] : memref<128x128xf32, #tpu.memory_space<vmem>>, vector<128x128xf32>
    tpu.vector_store %arg8[%c0_11, %c0_12], %12 {strides = array<i32>} : memref<128x128xf32, #tpu.memory_space<vmem>>, vector<128x128xf32>,
    %c1_i32 = arith.constant 1 : i32
    %14 = arith.cmpi eq, %arg1, %c1_i32 : i32
    %15 = arith.extui %14 : i1 to i32
    %c0_i32_13 = arith.constant 0 : i32
    %16 = arith.cmpi ne, %15, %c0_i32_13 : i32
    scf.if %16 {
      %c0_14 = arith.constant 0 : index
      %c0_15 = arith.constant 0 : index
      %17 = vector.load %arg8[%c0_14, %c0_15] : memref<128x128xf32, #tpu.memory_space<vmem>>, vector<128x128xf32>
      %c0_16 = arith.constant 0 : index
      %c0_17 = arith.constant 0 : index
      %18 = vector.load %arg6[%c0_16, %c0_17] : memref<1x128xf32, #tpu.memory_space<vmem>>, vector<1x128xf32>
      %19 = vector.broadcast %18 : vector<1x128xf32> to vector<128x128xf32>
      %20 = arith.addf %17, %19 : vector<128x128xf32>
      %c0_18 = arith.constant 0 : index
      %c0_19 = arith.constant 0 : index
      %21 = vector.load %arg7[%c0_18, %c0_19] : memref<128x128xf32, #tpu.memory_space<vmem>>, vector<128x128xf32>
      tpu.vector_store %arg7[%c0_18, %c0_19], %20 {strides = array<i32>} : memref<128x128xf32, #tpu.memory_space<vmem>>, vector<128x128xf32>,
    } else {
    }
    return
  }
  func.func @transform_0(%arg0: i32, %arg1: i32) -> (i32, i32) {
    %c0_i32 = arith.constant 0 : i32
    %c0_i32_0 = arith.constant 0 : i32
    return %arg0, %c0_i32 : i32, i32
  }
  func.func @transform_1(%arg0: i32, %arg1: i32) -> (i32, i32) {
    %c0_i32 = arith.constant 0 : i32
    %c0_i32_0 = arith.constant 0 : i32
    return %c0_i32, %arg1 : i32, i32
  }
  func.func @transform_2(%arg0: i32, %arg1: i32) -> (i32, i32) {
    %c0_i32 = arith.constant 0 : i32
    %c0_i32_0 = arith.constant 0 : i32
    return %c0_i32, %arg1 : i32, i32
  }
  func.func @transform_3(%arg0: i32, %arg1: i32) -> (i32, i32) {
    %c0_i32 = arith.constant 0 : i32
    %c0_i32_0 = arith.constant 0 : i32
    return %arg1, %c0_i32 : i32, i32
  }
  func.func @transform_4(%arg0: i32, %arg1: i32) -> (i32, i32) {
    %c0_i32 = arith.constant 0 : i32
    %c0_i32_0 = arith.constant 0 : i32
    %c0_i32_1 = arith.constant 0 : i32
    return %c0_i32, %c0_i32_0 : i32, i32
  }
  func.func @transform_5(%arg0: i32, %arg1: i32) -> (i32, i32) {
    %c0_i32 = arith.constant 0 : i32
    %c0_i32_0 = arith.constant 0 : i32
    return %arg0, %c0_i32 : i32, i32
  }
}

</mosaic_0001>

<bundles_post_ra>
// kernel: tpu_custom_call.1
= control target key start
LH: loop header
LB: loop body
LE: loop exit
PB: predicated region body
PF: predicated region fallthrough
CT: control target
= control target key end

     0   :  { %s2064_s0 = inlined_call_operand.hbm [shape: f32[256,128], index: 0, kind: input, shape index: {}]   ;;  %s2065_s1 = inlined_call_operand.hbm [shape: f32[128,256], index: 1, kind: input, shape index: {}]   ;;  %s2066_s2 = inlined_call_operand.vmem [shape: f32[1,256], index: 2, kind: input, shape index: {}]   ;;  %s2067_s3 = inlined_call_operand.hbm [shape: f32[256,128], index: 3, kind: input, shape index: {}]   ;;  %s2068_s4 = inlined_call_operand.vmem [shape: f32[1,128], index: 4, kind: input, shape index: {}]   ;;  %s2069_s5 = inlined_call_operand.hbm [shape: f32[256,128], index: 5, kind: output, shape index: {}]  }
   0x1   :  { %2086 = sst [smem:[#allocation21_spill]] %s2065_s1 }
   0x2   :  { %2087 = sst [smem:[#allocation22_spill]] %s2068_s4 }
   0x3   :  { %2088 = sst [smem:[#allocation23_spill]] %s2069_s5 }
   0x4   :  { %10 = vsyncpa [#allocation4], 0 }
   0x5   :  { %12 = vsyncpa [#allocation4 + $0x1], 0 }
   0x6   :  { %13 = vsyncpa [#allocation7], 0 }
   0x7   :  { %15 = vsyncpa [#allocation7 + $0x1], 0 }
   0x8   :  { %16 = vsyncpa [#allocation5], 0 }
   0x9   :  { %18 = vsyncpa [#allocation5 + $0x1], 0  ;;  %s1615_s18 = smov 0   ;;  %s1617_s19 = smov 0  }
   0xa   :  { %s1619_s20 = smov 0   ;;  %s1621_s21 = smov 0  }
   0xb   :  { %s1623_s22 = smov 0   ;;  %s1625_s23 = smov 0  }
   0xc   :  { %s1627_s24 = smov 0   ;;  %s1629_s25 = smov 0  }
   0xd   :  { %s1631_s26 = smov 0   ;;  %s1633_s27 = smov 0  }
   0xe   :  { %s1635_s28 = smov 0  }
   0xf LB: > { %2089 = sst [smem:[#allocation13_spill]] %s1541_s20  ;;  %s33_s29 = sadd.s32 1, %s1565_s26  ;;  %s1573_s28 = sphi %s1635_s28, %s24_s28   ;;  %s1569_s27 = sphi %s1633_s27, %s2129_s27   ;;  %s1565_s26 = sphi %s1631_s26, %s2135_s26   ;;  %s1561_s25 = sphi %s1629_s25, %s2127_s25   ;;  %s1557_s24 = sphi %s1627_s24, %s2134_s24   ;;  %s1553_s23 = sphi %s1625_s23, %s2126_s23   ;;  %s1549_s22 = sphi %s1623_s22, %s2133_s22   ;;  %s1545_s21 = sphi %s1621_s21, %s2132_s21   ;;  %s1541_s20 = sphi %s1619_s20, %s2124_s20   ;;  %s1537_s19 = sphi %s1617_s19, %s2131_s19   ;;  %s1533_s18 = sphi %s1615_s18, %s2130_s18  }
  0x10   : > { %2090 = sst [smem:[#allocation14_spill]] %s1553_s23  ;;  %p2072_p0 = scmp.eq.s32.totalorder %s1573_s28, 0 }
  0x11   : > { %2091 = sst [smem:[#allocation15_spill]] %s1561_s25  ;;  %p1672_p1 = scmp.ge.s32.totalorder %s33_s29, 2 }
  0x12   : > { %2092 = sst [smem:[#allocation16_spill]] %s1569_s27  ;;  %s69_s6 = sadd.s32 1, %s1541_s20 }
  0x13   : > { %p76_p2 = scmp.ne.s32.totalorder %s1541_s20, %s1537_s19  ;;  %s2137_s29 = smov (%p1672_p1, %s33_s29), 0 }
  0x14   : > { %2094 = sst [smem:[#allocation17_spill]] %s2137_s29  ;;  %s66_s7 = ssub.s32 %s1565_s26, %s2137_s29 }
  0x15   : > { %p78_p4 = por %p76_p2, %p2072_p0  ;;  %p2071_p5 = scmp.lt.s32.totalorder %s1573_s28, 4 }
  0x16   : > { %p67_p6 = scmp.eq.s32.totalorder %s66_s7, 0  ;;  %s229_s8 = sand.u32 1, %s1573_s28  }
  0x17   : > { %s231_s10 = sand.u32 1, %s1541_s20   ;;  %s978_s12 = sshll.u32 %s1565_s26, 7 }
  0x18   : > { %s1692_s9 = scalar_select %p67_p6, %s1541_s20, %s69_s6  }
  0x19   : > { %s1695_s11 = sshll.u32 %s231_s10, 7  ;;  %s2096_s1 = sld [smem:[#allocation21_spill]] }
  0x1a   : > { %2095 = sst [smem:[#allocation18_spill]] %s1692_s9  ;;  %s233_s16 = scalar_lea.vmem [#allocation6], %s1695_s11 }
  0x1b   : > { %s239_s17 = sshll.u32 %s233_s16, 4  ;;  %p1706_p7 = pnand %p2071_p5, %p78_p4  ;;  %s1710_s17 = int_to_ptr.vmem [resolvable:$true] %s239_s17 }
  0x1c   : > { %s1713_s7 = scalar_lea.sflag [#allocation7], %s229_s8 }
  0x1d   : > { %p2075_p10 = pneg %p1706_p7 }
  0x1f   : > { %s1701_s15 = scalar_lea.hbm %s2096_s1, %s978_s12  ;;  %s1362_s14 = scalar_lea.hbm %s2096_s1, 4096 }
  0x20   : > { %s1357_s10 = scalar_lea.hbm %s1701_s15, 2048  ;;  %p1363_p13 = scmp.lt.u32.totalorder %s1701_s15, %s2096_s1 }
  0x21   : > { %p1358_p9 = scmp.ne.s32.totalorder %s1701_s15, %s1357_s10  ;;  %p1364_p2 = scmp.lt.u32.totalorder %s1362_s14, %s1357_s10 }
  0x22   : > { %p1366_p6 = scmp.lt.u32.totalorder %s1357_s10, %s1701_s15 }
  0x23   : > { %p1360_p11 = pnand %p2075_p10, %p1358_p9  ;;  %p1365_p4 = por %p1364_p2, %p1363_p13 }
  0x25   : > { %p1361_p12 = pneg %p1360_p11  ;;  %p1367_p5 = por %p1366_p6, %p1365_p4 }
  0x27   : > { %p1368_p3 = pnand %p1367_p5, %p1361_p12 }
  0x29   : > { %1371 = shalt.err (!%p1368_p3)
}
  0x2a   : > { %s1372_s8 = scalar_lea.vmem %s1710_s17, 2048  ;;  %s1575_s12 = smov [#allocation6]  }
  0x2b   : > { %p1373_p9 = scmp.ne.s32.totalorder %s1710_s17, %s1372_s8  ;;  %s1377_s13 = sshll.u32 %s1575_s12, 4  ;;  %s1378_s13 = int_to_ptr.vmem [resolvable:$false] %s1377_s13 }
  0x2c   : > { %s1379_s29 = scalar_lea.vmem %s1378_s13, 4096  ;;  %p1380_p8 = scmp.lt.s32.totalorder %s1710_s17, %s1378_s13 }
  0x2d   : > { %p1375_p11 = pnand %p1373_p9, %p2075_p10  ;;  %p1381_p13 = scmp.lt.s32.totalorder %s1379_s29, %s1372_s8 }
  0x2f   : > { %p1376_p0 = pneg %p1375_p11  ;;  %p1382_p2 = por %p1381_p13, %p1380_p8 }
  0x31   : > { %p1383_p4 = pnand %p1382_p2, %p1376_p0 }
  0x33   : > { %1386 = shalt.err (!%p1383_p4)
}
  0x34   : > { %s1576_s10 = smov 256   ;;  %s2073_s14 = smov 128  }
  0x35   : > { %s2076_s16 = smov 8   ;;  %p274_p0 = scmp.lt.s32.totalorder %s1573_s28, 5 }
  0x36   : > { %1253 = dma.hbm_to_vmem [thread:$0]  (!%p1706_p7), %s1701_s15, 2048, %s1710_s17, %s1713_s7, %s1576_s10, %s2073_s14, %s2076_s16  }
  0x37   : > { %p2098_p3 = scmp.ge.s32.totalorder %s1573_s28, 1  ;;  %s1751_s12 = sadd.s32 4294967295, %s1573_s28  }
  0x38   : > { %s971_s13 = sadd.s32 4294967294, %s1573_s28   ;;  %s36_s29 = sadd.s32 1, %s1569_s27 }
  0x39   : > { %p1746_p5 = pnand %p2098_p3, %p274_p0  ;;  %s43_s1 = sadd.s32 1, %s1553_s23 }
  0x3a   : > { %s2139_s29 = smov (!%p1672_p1, %s36_s29), %s1569_s27  ;;  %p50_p8 = scmp.ne.s32.totalorder %s1553_s23, %s1549_s22 }
  0x3b   : > { %s2099_s8 = scalar_select %p1746_p5, 1, 0 }
  0x3c   : > { %p56_p12 = scmp.ne.s32.totalorder %s1549_s22, %s1545_s21  ;;  %p38_p6 = scmp.ge.s32.totalorder %s2139_s29, 2 }
  0x3d   : > { %p57_p9 = scmp.eq.s32.totalorder %s1751_s12, 0  ;;  %p2100_p11 = scmp.eq.s32.totalorder %s1573_s28, 0 }
  0x3e   : > { %p179_p2 = scmp.eq.s32.totalorder %s1751_s12, 3  ;;  %s2141_s29 = smov (%p38_p6, %s2139_s29), 0 }
  0x3f   : > { %p1766_p13 = por %p2100_p11, %p50_p8  ;;  %2102 = sst [smem:[#allocation19_spill]] %s2141_s29 }
  0x40   : > { %p1776_p1 = por %p57_p9, %p56_p12  ;;  %p2104_p4 = scmp.ne.s32.totalorder %s1537_s19, %s1533_s18 }
  0x41   : > { %s40_s10 = ssub.s32 %s1569_s27, %s2141_s29  ;;  %p1789_p3 = por %p179_p2, %p50_p8 }
  0x42   : > { %s2103_s30 = scalar_select %p1776_p1, 1, 0 }
  0x43   : > { %p1783_p0 = por %p2104_p4, %p57_p9  ;;  %p41_p11 = scmp.eq.s32.totalorder %s40_s10, 0 }
  0x44   : > { %s2106_s14 = scalar_select %p1789_p3, 1, 0 }
  0x45   : > { %s2105_s17 = scalar_select %p1783_p0, 1, 0 }
  0x46   : > { %p185_p10 = scmp.eq.s32.totalorder %s971_s13, 3  ;;  %s208_s16 = sand.u32 1, %s1553_s23  }
  0x47   : > { %s996_s9 = sshll.u32 %s1569_s27, 11  ;;  %s974_s18 = sshll.u32 %s208_s16, 7 }
  0x48   : > { %s1796_s20 = scalar_select %p41_p11, %s1553_s23, %s43_s1  }
  0x49   : > { %p1801_p6 = por %p185_p10, %p56_p12  ;;  %s1808_s29 = scalar_lea.hbm %s2064_s0, %s996_s9 }
  0x4a   : > { %2107 = sst [smem:[#allocation20_spill]] %s1796_s20  ;;  %p2109_p8 = scmp.lt.s32.totalorder %s1573_s28, 4 }
  0x4b   : > { %s2108_s5 = scalar_select %p1801_p6, 1, 0 }
  0x4c   : > { %p1814_p9 = pnand %p2109_p8, %p1766_p13  ;;  %s212_s13 = scalar_lea.vmem [#allocation3], %s974_s18 }
  0x4d   : > { %s219_s10 = sshll.u32 %s212_s13, 4  ;;  %s1820_s27 = scalar_lea.sflag [#allocation4], %s208_s16  ;;  %s1818_s10 = int_to_ptr.vmem [resolvable:$true] %s219_s10 }
  0x4e   : > { %s1387_s4 = scalar_lea.hbm %s1808_s29, 2048  ;;  %p1389_p12 = pneg %p1814_p9 }
  0x4f   : > { %p1388_p10 = scmp.ne.s32.totalorder %s1808_s29, %s1387_s4  ;;  %s1392_s15 = scalar_lea.hbm %s2064_s0, 4096 }
  0x50   : > { %p1393_p13 = scmp.lt.u32.totalorder %s1808_s29, %s2064_s0  ;;  %p1394_p11 = scmp.lt.u32.totalorder %s1392_s15, %s1387_s4 }
  0x51   : > { %p1390_p2 = pnand %p1389_p12, %p1388_p10  ;;  %p1396_p6 = scmp.lt.u32.totalorder %s1387_s4, %s1808_s29 }
  0x52   : > { %p1395_p8 = por %p1394_p11, %p1393_p13 }
  0x53   : > { %p1391_p4 = pneg %p1390_p2 }
  0x54   : > { %p1397_p3 = por %p1396_p6, %p1395_p8 }
  0x56   : > { %p1398_p0 = pnand %p1397_p3, %p1391_p4 }
  0x58   : > { %1401 = shalt.err (!%p1398_p0)
}
  0x59   : > { %s1402_s16 = scalar_lea.vmem %s1818_s10, 2048  ;;  %s1579_s18 = smov [#allocation3]  }
  0x5a   : > { %p1403_p10 = scmp.ne.s32.totalorder %s1818_s10, %s1402_s16  ;;  %s1407_s13 = sshll.u32 %s1579_s18, 4  ;;  %s1408_s13 = int_to_ptr.vmem [resolvable:$false] %s1407_s13 }
  0x5b   : > { %s1409_s20 = scalar_lea.vmem %s1408_s13, 4096  ;;  %p1410_p5 = scmp.lt.s32.totalorder %s1818_s10, %s1408_s13 }
  0x5c   : > { %p1405_p2 = pnand %p1403_p10, %p1389_p12  ;;  %p1411_p13 = scmp.lt.s32.totalorder %s1409_s20, %s1402_s16 }
  0x5e   : > { %p1406_p1 = pneg %p1405_p2  ;;  %p1412_p11 = por %p1411_p13, %p1410_p5 }
  0x60   : > { %p1413_p6 = pnand %p1412_p11, %p1406_p1 }
  0x62   : > { %1416 = shalt.err (!%p1413_p6)
}
  0x63   : > { %s2111_s23 = smov 8   ;;  %s2112_s4 = smov 128  }
  0x64   : > { %1250 = dma.hbm_to_vmem [thread:$0]  (!%p1814_p9), %s1808_s29, 2048, %s1818_s10, %s1820_s27, %s2112_s4, %s2112_s4, %s2111_s23  }
  0x65   : > { %s997_s25 = sshll.u32 %s1565_s26, 11  ;;  %s259_s9 = scalar_lea.vmem [#allocation8], %s1695_s11 }
  0x66   : > { %s266_s15 = sshll.u32 %s259_s9, 4  ;;  %s1856_s13 = scalar_lea.hbm %s2067_s3, %s997_s25  ;;  %s1858_s15 = int_to_ptr.vmem [resolvable:$true] %s266_s15 }
  0x67   : > { %s1417_s1 = scalar_lea.hbm %s1856_s13, 2048  ;;  %p2113_p1 = pneg %p1706_p7 }
  0x68   : > { %p1418_p5 = scmp.ne.s32.totalorder %s1856_s13, %s1417_s1  ;;  %s1422_s29 = scalar_lea.hbm %s2067_s3, 4096 }
  0x69   : > { %p1423_p9 = scmp.lt.u32.totalorder %s1856_s13, %s2067_s3  ;;  %p1424_p12 = scmp.lt.u32.totalorder %s1422_s29, %s1417_s1 }
  0x6a   : > { %p1420_p0 = pnand %p1418_p5, %p2113_p1  ;;  %p1426_p8 = scmp.lt.u32.totalorder %s1417_s1, %s1856_s13 }
  0x6b   : > { %p1425_p4 = por %p1424_p12, %p1423_p9 }
  0x6c   : > { %p1421_p3 = pneg %p1420_p0 }
  0x6d   : > { %p1427_p10 = por %p1426_p8, %p1425_p4 }
  0x6f   : > { %p1428_p2 = pnand %p1427_p10, %p1421_p3 }
  0x71   : > { %1431 = shalt.err (!%p1428_p2)
}
  0x72   : > { %s1432_s25 = scalar_lea.vmem %s1858_s15, 2048  ;;  %p2114_p11 = pmov %p2113_p1 }
  0x73   : > { %p1433_p13 = scmp.ne.s32.totalorder %s1858_s15, %s1432_s25  ;;  %s1580_s9 = smov [#allocation8]  }
  0x74   : > { %s1437_s18 = sshll.u32 %s1580_s9, 4  ;;  %s1438_s18 = int_to_ptr.vmem [resolvable:$false] %s1437_s18 }
  0x75   : > { %p1435_p6 = pnand %p1433_p13, %p2114_p11  ;;  %s1439_s16 = scalar_lea.vmem %s1438_s18, 4096 }
  0x76   : > { %p1440_p1 = scmp.lt.s32.totalorder %s1858_s15, %s1438_s18  ;;  %p1441_p0 = scmp.lt.s32.totalorder %s1439_s16, %s1432_s25 }
  0x77   : > { %p1436_p5 = pneg %p1435_p6 }
  0x78   : > { %p1442_p9 = por %p1441_p0, %p1440_p1 }
  0x7a   : > { %p1443_p12 = pnand %p1442_p9, %p1436_p5 }
  0x7c   : > { %1446 = shalt.err (!%p1443_p12)
}
  0x7d   : > { %1256 = dma.hbm_to_vmem [thread:$0]  (!%p1706_p7), %s1856_s13, 2048, %s1858_s15, %s1713_s7, %s2112_s4, %s2112_s4, %s2111_s23  }
  0x7e   : > { %p2115_p3 = scmp.ne.s32.totalorder %s2099_s8, 0 }
  0x7f   : > { %s1890_s1 = sand.u32 (!%p2115_p3), 1, %s1549_s22   ;;  %p2116_p4 = scmp.ne.s32.totalorder (!%p2115_p3), %s2103_s30, 0 }
  0x80   : > { %278 = sbr.rel (%p2115_p3) target bundleno = 686 (0x2ae), region = 40  ;;  %s983_s27 = sshll.u32 (!%p2115_p3), %s1890_s1, 7 }
  0x81   : > { %s281_s11 = scalar_lea.sflag (!%p2115_p3), [#allocation4], %s1890_s1  ;;  %s1894_s29 = scalar_lea.vmem (!%p2115_p3), [#allocation3], %s983_s27 }
  0x87   : > { %1520 = dma.done.wait (%p2116_p4), %s281_s11, 2048  }
  0x88   : > { %1522 = vsyncadd (%p2116_p4), %s281_s11, 4294965248  ;;  %s289_s6 = sand.u32 1, %s1751_s12   ;;  %s291_s7 = sand.u32 1, %s1537_s19  }
  0x89   : > { %s984_s8 = sshll.u32 %s291_s7, 7  ;;  %s290_s23 = scalar_lea.sflag [#allocation7], %s289_s6 }
  0x8a   : > { %s1902_s4 = scalar_lea.vmem [#allocation6], %s984_s8  ;;  %p2117_p7 = scmp.ne.s32.totalorder %s2105_s17, 0 }
  0x8c   : > { %1524 = dma.done.wait (%p2117_p7), %s290_s23, 4096  }
  0x8d   : > { %1526 = vsyncadd (%p2117_p7), %s290_s23, 4294963200  ;;  %p343_p8 = scmp.lt.s32.totalorder %s1557_s24, 1  ;;  %s1916_s10 = scalar_lea.vmem [#allocation8], %s984_s8 }
  0x8e   : > { %s1918_s20 = scalar_lea.vmem [#allocation9], %s983_s27  ;;  %p987_p10 = scmp.ne.s32.totalorder %s1557_s24, 0 }
  0x8f   : > { %s1910_s15 = scalar_select %p343_p8, %s1557_s24, 1 }
  0x90   : > { %351 = sbr.rel (%p987_p10) target bundleno = 153 (0x99), region = 56  ;;  %v1581_v0 = vmov (!%p987_p10), 0.0  }
  0x91   : > { %s345_s12 = scalar_lea.vmem %s2066_s2, %s1910_s15  ;;  %352 = vst [vmem:[#allocation2] sm:$0xff] (!%p987_p10), %v1581_v0  ;;  %353 = vst [vmem:[#allocation2 + $0x8] sm:$0xff] (!%p987_p10), %v1581_v0 }
  0x92   : > { %354 = vst [vmem:[#allocation2 + $0x10] sm:$0xff] (!%p987_p10), %v1581_v0  ;;  %355 = vst [vmem:[#allocation2 + $0x18] sm:$0xff] (!%p987_p10), %v1581_v0 }
  0x93   : > { %356 = vst [vmem:[#allocation2 + $0x20] sm:$0xff] (!%p987_p10), %v1581_v0  ;;  %357 = vst [vmem:[#allocation2 + $0x28] sm:$0xff] (!%p987_p10), %v1581_v0 }
  0x94   : > { %358 = vst [vmem:[#allocation2 + $0x30] sm:$0xff] (!%p987_p10), %v1581_v0  ;;  %359 = vst [vmem:[#allocation2 + $0x38] sm:$0xff] (!%p987_p10), %v1581_v0 }
  0x95   : > { %360 = vst [vmem:[#allocation2 + $0x40] sm:$0xff] (!%p987_p10), %v1581_v0  ;;  %361 = vst [vmem:[#allocation2 + $0x48] sm:$0xff] (!%p987_p10), %v1581_v0 }
  0x96   : > { %362 = vst [vmem:[#allocation2 + $0x50] sm:$0xff] (!%p987_p10), %v1581_v0  ;;  %363 = vst [vmem:[#allocation2 + $0x58] sm:$0xff] (!%p987_p10), %v1581_v0 }
  0x97   : > { %364 = vst [vmem:[#allocation2 + $0x60] sm:$0xff] %v1581_v0  ;;  %365 = vst [vmem:[#allocation2 + $0x68] sm:$0xff] %v1581_v0 }
  0x98   : > { %366 = vst [vmem:[#allocation2 + $0x70] sm:$0xff] %v1581_v0  ;;  %367 = vst [vmem:[#allocation2 + $0x78] sm:$0xff] %v1581_v0 }
  0x99 PF: > { %v384_v1 = vld [vmem:[%s1902_s4] sm:$0xff]  ;;  %v385_v2 = vld [vmem:[%s1902_s4 + $0x8] sm:$0xff]  ;;  %v386_v3 = vld [vmem:[%s1902_s4 + $0x10] sm:$0xff]  ;;  %p989_p2 = scmp.ne.s32.totalorder %s1557_s24, 1 }
  0x9a   : > { %v1175_v4 = vpack.c.bf16 %v385_v2, %v384_v1  ;;  %v387_v5 = vld [vmem:[%s1902_s4 + $0x18] sm:$0xff]  ;;  %v388_v7 = vld [vmem:[%s1902_s4 + $0x20] sm:$0xff]  ;;  %v389_v8 = vld [vmem:[%s1902_s4 + $0x28] sm:$0xff]  ;;  %s2118_s16 = sld [smem:[#allocation22_spill]] (!%p989_p2) }
  0x9b   : > { %v1179_v6 = vpack.c.bf16 %v387_v5, %v386_v3  ;;  %v1183_v9 = vpack.c.bf16 %v389_v8, %v388_v7  ;;  %v368_v10 = vld [vmem:[%s1894_s29] sm:$0xff]  ;;  %v390_v11 = vld [vmem:[%s1902_s4 + $0x30] sm:$0xff]  ;;  %v391_v12 = vld [vmem:[%s1902_s4 + $0x38] sm:$0xff] }
  0x9c   : > { %1176 = vmatprep.subr.bf16.mxu0 %v1175_v4  ;;  %1095 = vmatprep.mubr.f32.mxu0 %v368_v10  ;;  %v1187_v13 = vpack.c.bf16 %v391_v12, %v390_v11  ;;  %v392_v14 = vld [vmem:[%s1902_s4 + $0x40] sm:$0xff]  ;;  %v393_v15 = vld [vmem:[%s1902_s4 + $0x48] sm:$0xff]  ;;  %v570_v18 = vld [vmem:[%s1916_s10 + $0x10] sm:$0xff] }
  0x9d   : > { %1178 = vmatpush3.bf16.msra.mxu0 %v1175_v4  ;;  %v568_v16 = vld [vmem:[%s1916_s10] sm:$0xff]  ;;  %v569_v17 = vld [vmem:[%s1916_s10 + $0x8] sm:$0xff]  ;;  %v571_v19 = vld [vmem:[%s1916_s10 + $0x18] sm:$0xff]  ;;  %v1191_v22 = vpack.c.bf16 %v393_v15, %v392_v14 }
  0x9e   : > { %1180 = vmatprep.subr.bf16.mxu0 %v1179_v6  ;;  %v1207_v20 = vpack.c.bf16 %v569_v17, %v568_v16  ;;  %v1211_v21 = vpack.c.bf16 %v571_v19, %v570_v18  ;;  %v572_v23 = vld [vmem:[%s1916_s10 + $0x20] sm:$0xff]  ;;  %v573_v24 = vld [vmem:[%s1916_s10 + $0x28] sm:$0xff]  ;;  %v394_v25 = vld [vmem:[%s1902_s4 + $0x50] sm:$0xff] }
  0x9f   : > { %v395_v26 = vld [vmem:[%s1902_s4 + $0x58] sm:$0xff]  ;;  %v1215_v27 = vpack.c.bf16 %v573_v24, %v572_v23  ;;  %v574_v29 = vld [vmem:[%s1916_s10 + $0x30] sm:$0xff]  ;;  %v396_v31 = vld [vmem:[%s1902_s4 + $0x60] sm:$0xff] }
  0xa0   : > { %1208 = vmatprep.subr.bf16.mxu1 %v1207_v20  ;;  %v1195_v28 = vpack.c.bf16 %v395_v26, %v394_v25  ;;  %v575_v30 = vld [vmem:[%s1916_s10 + $0x38] sm:$0xff]  ;;  %v397_v32 = vld [vmem:[%s1902_s4 + $0x68] sm:$0xff]  ;;  %v576_v35 = vld [vmem:[%s1916_s10 + $0x40] sm:$0xff] }
  0xa1   : > { %1182 = vmatpush3.bf16.msra.mxu0 %v1179_v6  ;;  %1210 = vmatpush3.bf16.msra.mxu1 %v1207_v20  ;;  %v1219_v33 = vpack.c.bf16 %v575_v30, %v574_v29  ;;  %v1199_v34 = vpack.c.bf16 %v397_v32, %v396_v31  ;;  %v577_v36 = vld [vmem:[%s1916_s10 + $0x48] sm:$0xff]  ;;  %v398_v37 = vld [vmem:[%s1902_s4 + $0x70] sm:$0xff]  ;;  %v399_v38 = vld [vmem:[%s1902_s4 + $0x78] sm:$0xff] }
  0xa2   : > { %1184 = vmatprep.subr.bf16.mxu0 %v1183_v9  ;;  %1212 = vmatprep.subr.bf16.mxu1 %v1211_v21  ;;  %v1223_v39 = vpack.c.bf16 %v577_v36, %v576_v35  ;;  %v1203_v40 = vpack.c.bf16 %v399_v38, %v398_v37  ;;  %v578_v41 = vld [vmem:[%s1916_s10 + $0x50] sm:$0xff]  ;;  %v579_v42 = vld [vmem:[%s1916_s10 + $0x58] sm:$0xff]  ;;  %v580_v44 = vld [vmem:[%s1916_s10 + $0x60] sm:$0xff] }
  0xa3   : > { %v1227_v43 = vpack.c.bf16 %v579_v42, %v578_v41  ;;  %v581_v45 = vld [vmem:[%s1916_s10 + $0x68] sm:$0xff]  ;;  %v370_v48 = vld [vmem:[%s1894_s29 + $0x10] sm:$0xff]  ;;  %v371_v49 = vld [vmem:[%s1894_s29 + $0x18] sm:$0xff] }
  0xa4   : > { %v369_v46 = vld [vmem:[%s1894_s29 + $0x8] sm:$0xff]  ;;  %v1231_v47 = vpack.c.bf16 %v581_v45, %v580_v44  ;;  %v372_v50 = vld [vmem:[%s1894_s29 + $0x20] sm:$0xff]  ;;  %v374_v52 = vld [vmem:[%s1894_s29 + $0x30] sm:$0xff] }
  0xa5   : > { %1186 = vmatpush3.bf16.msra.mxu0 %v1183_v9  ;;  %1214 = vmatpush3.bf16.msra.mxu1 %v1211_v21  ;;  %v373_v51 = vld [vmem:[%s1894_s29 + $0x28] sm:$0xff]  ;;  %v375_v53 = vld [vmem:[%s1894_s29 + $0x38] sm:$0xff]  ;;  %v376_v54 = vld [vmem:[%s1894_s29 + $0x40] sm:$0xff] }
  0xa6   : > { %1188 = vmatprep.subr.bf16.mxu0 %v1187_v13  ;;  %1216 = vmatprep.subr.bf16.mxu1 %v1215_v27  ;;  %v377_v55 = vld [vmem:[%s1894_s29 + $0x48] sm:$0xff]  ;;  %v378_v56 = vld [vmem:[%s1894_s29 + $0x50] sm:$0xff]  ;;  %v379_v57 = vld [vmem:[%s1894_s29 + $0x58] sm:$0xff] }
  0xa7   : > { %v380_v58 = vld [vmem:[%s1894_s29 + $0x60] sm:$0xff]  ;;  %v381_v59 = vld [vmem:[%s1894_s29 + $0x68] sm:$0xff]  ;;  %v382_v60 = vld [vmem:[%s1894_s29 + $0x70] sm:$0xff] }
  0xa8   : > { %v383_v61 = vld [vmem:[%s1894_s29 + $0x78] sm:$0xff]  ;;  %v582_v62 = vld [vmem:[%s1916_s10 + $0x70] sm:$0xff]  ;;  %v988_v1 = vld [vmem:[%s345_s12] ss:$0 sm:$0xff] }
  0xa9   : > { %1190 = vmatpush3.bf16.msra.mxu0 %v1187_v13  ;;  %1218 = vmatpush3.bf16.msra.mxu1 %v1215_v27  ;;  %v583_v63 = vld [vmem:[%s1916_s10 + $0x78] sm:$0xff]  ;;  %v552_v35 = vld [vmem:[#allocation2] sm:$0xff]  ;;  %v554_v41 = vld [vmem:[#allocation2 + $0x10] sm:$0xff] }
  0xaa   : > { %1192 = vmatprep.subr.bf16.mxu0 %v1191_v22  ;;  %1220 = vmatprep.subr.bf16.mxu1 %v1219_v33  ;;  %v1235_v0 = vpack.c.bf16 %v583_v63, %v582_v62 }
  0xad   : > { %1194 = vmatpush3.bf16.msra.mxu0 %v1191_v22  ;;  %1222 = vmatpush3.bf16.msra.mxu1 %v1219_v33 }
  0xae   : > { %1196 = vmatprep.subr.bf16.mxu0 %v1195_v28  ;;  %1224 = vmatprep.subr.bf16.mxu1 %v1223_v39 }
  0xb1   : > { %1198 = vmatpush3.bf16.msra.mxu0 %v1195_v28  ;;  %1226 = vmatpush3.bf16.msra.mxu1 %v1223_v39 }
  0xb2   : > { %1200 = vmatprep.subr.bf16.mxu0 %v1199_v34  ;;  %1228 = vmatprep.subr.bf16.mxu1 %v1227_v43 }
  0xb5   : > { %1202 = vmatpush3.bf16.msra.mxu0 %v1199_v34  ;;  %1230 = vmatpush3.bf16.msra.mxu1 %v1227_v43  ;;  %v553_v34 = vld [vmem:[#allocation2 + $0x8] sm:$0xff] }
  0xb6   : > { %1204 = vmatprep.subr.bf16.mxu0 %v1203_v40  ;;  %1232 = vmatprep.subr.bf16.mxu1 %v1231_v47 }
  0xb9   : > { %1206 = vmatpush3.bf16.msra.mxu0 %v1203_v40  ;;  %1234 = vmatpush3.bf16.msra.mxu1 %v1231_v47  ;;  %v555_v40 = vld [vmem:[#allocation2 + $0x18] sm:$0xff]  ;;  %v556_v47 = vld [vmem:[#allocation2 + $0x20] sm:$0xff] }
  0xba   : > { %1236 = vmatprep.subr.bf16.mxu1 %v1235_v0 }
  0xbc   : > { %1096 = vmatmul.mubr.f32.vlgmr.msra.gmra.mrb[0].mxu0 %v369_v46  ;;  %v557_v46 = vld [vmem:[#allocation2 + $0x28] sm:$0xff] }
  0xbd   : > { %1098 = vmatprep.mubr.f32.mxu0 %v370_v48  ;;  %1238 = vmatpush3.bf16.msra.mxu1 %v1235_v0  ;;  %v563_v0 = vld [vmem:[#allocation2 + $0x58] sm:$0xff] }
  0xc0   : > { %1099 = vmatmul.mubr.f32.gmra.mrb[2].mxu0 %v371_v49 }
  0xc1   : > { %1101 = vmatprep.mubr.f32.mxu0 %v372_v50 }
  0xc4   : > { %1102 = vmatmul.mubr.f32.gmra.mrb[4].mxu0 %v373_v51 }
  0xc5   : > { %1104 = vmatprep.mubr.f32.mxu0 %v374_v52  ;;  %v559_v52 = vld [vmem:[#allocation2 + $0x38] sm:$0xff] }
  0xc8   : > { %1105 = vmatmul.mubr.f32.gmra.mrb[6].mxu0 %v375_v53  ;;  %v558_v53 = vld [vmem:[#allocation2 + $0x30] sm:$0xff] }
  0xc9   : > { %1107 = vmatprep.mubr.f32.mxu0 %v376_v54 }
  0xcc   : > { %1108 = vmatmul.mubr.f32.gmra.mrb[8].mxu0 %v377_v55 }
  0xcd   : > { %1110 = vmatprep.mubr.f32.mxu0 %v378_v56 }
  0xd0   : > { %1111 = vmatmul.mubr.f32.gmra.mrb[10].mxu0 %v379_v57 }
  0xd1   : > { %1113 = vmatprep.mubr.f32.mxu0 %v380_v58  ;;  %v561_v58 = vld [vmem:[#allocation2 + $0x48] sm:$0xff] }
  0xd4   : > { %1114 = vmatmul.mubr.f32.gmra.mrb[12].mxu0 %v381_v59  ;;  %v560_v59 = vld [vmem:[#allocation2 + $0x40] sm:$0xff] }
  0xd5   : > { %1116 = vmatprep.mubr.f32.mxu0 %v382_v60 }
  0xd8   : > { %1117 = vmatmul.mubr.f32.gmra.mrb[14].mxu0 %v383_v61 }
 0x18f   : > { %v1097_v2 = vpop.f32.mrb[0].mxu0 }
 0x190   : > { %v473_v3 = vpop.f32.mrb[1].mxu0  ;;  %v479_v5 = vadd.f32 %v1097_v2, %v988_v1 }
 0x191   : > { %v474_v4 = vadd.f32 %v988_v1, %v473_v3 }
 0x193   : > { %v1100_v6 = vpop.f32.mrb[2].mxu0  ;;  %1151 = vmatprep.mubr.f32.mxu1 %v474_v4 }
 0x194   : > { %v483_v7 = vpop.f32.mrb[3].mxu0  ;;  %1152 = vmatmul.mubr.f32.vlgmr.msra.gmra.mrb[0].mxu1 %v479_v5  ;;  %v489_v9 = vadd.f32 %v1100_v6, %v988_v1  ;;  %v565_v6 = vld [vmem:[#allocation2 + $0x68] sm:$0xff] }
 0x195   : > { %v484_v8 = vadd.f32 %v988_v1, %v483_v7  ;;  %v564_v7 = vld [vmem:[#allocation2 + $0x60] sm:$0xff] }
 0x197   : > { %v1103_v10 = vpop.f32.mrb[4].mxu0  ;;  %1154 = vmatprep.mubr.f32.mxu1 %v484_v8 }
 0x198   : > { %v493_v11 = vpop.f32.mrb[5].mxu0  ;;  %1155 = vmatmul.mubr.f32.gmra.mrb[2].mxu1 %v489_v9  ;;  %v499_v13 = vadd.f32 %v1103_v10, %v988_v1 }
 0x199   : > { %v494_v12 = vadd.f32 %v988_v1, %v493_v11 }
 0x19b   : > { %v1106_v14 = vpop.f32.mrb[6].mxu0  ;;  %1157 = vmatprep.mubr.f32.mxu1 %v494_v12  ;;  %v567_v12 = vld [vmem:[#allocation2 + $0x78] sm:$0xff] }
 0x19c   : > { %v503_v15 = vpop.f32.mrb[7].mxu0  ;;  %1158 = vmatmul.mubr.f32.gmra.mrb[4].mxu1 %v499_v13  ;;  %v509_v17 = vadd.f32 %v1106_v14, %v988_v1  ;;  %v566_v13 = vld [vmem:[#allocation2 + $0x70] sm:$0xff] }
 0x19d   : > { %v504_v16 = vadd.f32 %v988_v1, %v503_v15 }
 0x19f   : > { %v1109_v18 = vpop.f32.mrb[8].mxu0  ;;  %1160 = vmatprep.mubr.f32.mxu1 %v504_v16 }
 0x1a0   : > { %v513_v19 = vpop.f32.mrb[9].mxu0  ;;  %1161 = vmatmul.mubr.f32.gmra.mrb[6].mxu1 %v509_v17  ;;  %v519_v21 = vadd.f32 %v1109_v18, %v988_v1 }
 0x1a1   : > { %v514_v20 = vadd.f32 %v988_v1, %v513_v19  ;;  %v990_v19 = vld [vmem:[%s2118_s16] ss:$0 sm:$0xff] (!%p989_p2) }
 0x1a3   : > { %v1112_v22 = vpop.f32.mrb[10].mxu0  ;;  %1163 = vmatprep.mubr.f32.mxu1 %v514_v20 }
 0x1a4   : > { %v523_v23 = vpop.f32.mrb[11].mxu0  ;;  %1164 = vmatmul.mubr.f32.gmra.mrb[8].mxu1 %v519_v21  ;;  %v529_v25 = vadd.f32 %v1112_v22, %v988_v1 }
 0x1a5   : > { %v524_v24 = vadd.f32 %v988_v1, %v523_v23 }
 0x1a7   : > { %v1115_v26 = vpop.f32.mrb[12].mxu0  ;;  %1166 = vmatprep.mubr.f32.mxu1 %v524_v24 }
 0x1a8   : > { %v533_v27 = vpop.f32.mrb[13].mxu0  ;;  %1167 = vmatmul.mubr.f32.gmra.mrb[10].mxu1 %v529_v25  ;;  %v539_v29 = vadd.f32 %v1115_v26, %v988_v1 }
 0x1a9   : > { %v534_v28 = vadd.f32 %v988_v1, %v533_v27 }
 0x1ab   : > { %v1118_v30 = vpop.f32.mrb[14].mxu0  ;;  %1169 = vmatprep.mubr.f32.mxu1 %v534_v28 }
 0x1ac   : > { %v543_v31 = vpop.f32.mrb[15].mxu0  ;;  %1170 = vmatmul.mubr.f32.gmra.mrb[12].mxu1 %v539_v29  ;;  %v549_v33 = vadd.f32 %v1118_v30, %v988_v1 }
 0x1ad   : > { %v544_v32 = vadd.f32 %v988_v1, %v543_v31  ;;  %v562_v1 = vld [vmem:[#allocation2 + $0x50] sm:$0xff] }
 0x1af   : > { %1172 = vmatprep.mubr.f32.mxu1 %v544_v32 }
 0x1b0   : > { %1173 = vmatmul.mubr.f32.gmra.mrb[14].mxu1 %v549_v33 }
 0x267   : > { %v1153_v36 = vpop.f32.mrb[0].mxu1 }
 0x268   : > { %v730_v37 = vadd.f32 %v1153_v36, %v553_v34  ;;  %v650_v38 = vpop.f32.mrb[1].mxu1 }
 0x269   : > { %v729_v39 = vadd.f32 %v650_v38, %v552_v35 }
 0x26a   : > { %746 = vst [vmem:[#allocation2 + $0x8] sm:$0xff] %v730_v37 }
 0x26b   : > { %745 = vst [vmem:[#allocation2] sm:$0xff] %v729_v39  ;;  %v1156_v42 = vpop.f32.mrb[2].mxu1 }
 0x26c   : > { %v732_v43 = vadd.f32 %v1156_v42, %v555_v40  ;;  %v660_v44 = vpop.f32.mrb[3].mxu1 }
 0x26d   : > { %v731_v45 = vadd.f32 %v660_v44, %v554_v41 }
 0x26e   : > { %748 = vst [vmem:[#allocation2 + $0x18] sm:$0xff] %v732_v43 }
 0x26f   : > { %747 = vst [vmem:[#allocation2 + $0x10] sm:$0xff] %v731_v45  ;;  %v1159_v48 = vpop.f32.mrb[4].mxu1 }
 0x270   : > { %v734_v49 = vadd.f32 %v1159_v48, %v557_v46  ;;  %v670_v50 = vpop.f32.mrb[5].mxu1 }
 0x271   : > { %v733_v51 = vadd.f32 %v670_v50, %v556_v47  ;;  %v766_v20 = vld [vmem:[#allocation2 + $0x8] sm:$0xff] (!%p989_p2) }
 0x272   : > { %750 = vst [vmem:[#allocation2 + $0x28] sm:$0xff] %v734_v49  ;;  %v765_v18 = vld [vmem:[#allocation2] sm:$0xff] (!%p989_p2)  ;;  %v789_v22 = vadd.f32 (!%p989_p2), %v990_v19, %v766_v20 }
 0x273   : > { %749 = vst [vmem:[#allocation2 + $0x20] sm:$0xff] %v733_v51  ;;  %v1162_v54 = vpop.f32.mrb[6].mxu1  ;;  %v788_v21 = vadd.f32 (!%p989_p2), %v990_v19, %v765_v18 }
 0x274   : > { %v736_v55 = vadd.f32 %v1162_v54, %v559_v52  ;;  %v680_v56 = vpop.f32.mrb[7].mxu1  ;;  %805 = vst [vmem:[%s1918_s20 + $0x8] sm:$0xff] (!%p989_p2), %v789_v22 }
 0x275   : > { %v735_v57 = vadd.f32 %v680_v56, %v558_v53  ;;  %v768_v24 = vld [vmem:[#allocation2 + $0x18] sm:$0xff] (!%p989_p2)  ;;  %804 = vst [vmem:[%s1918_s20] sm:$0xff] (!%p989_p2), %v788_v21 }
 0x276   : > { %752 = vst [vmem:[#allocation2 + $0x38] sm:$0xff] %v736_v55  ;;  %v767_v23 = vld [vmem:[#allocation2 + $0x10] sm:$0xff] (!%p989_p2)  ;;  %v791_v27 = vadd.f32 (!%p989_p2), %v990_v19, %v768_v24 }
 0x277   : > { %751 = vst [vmem:[#allocation2 + $0x30] sm:$0xff] %v735_v57  ;;  %v1165_v60 = vpop.f32.mrb[8].mxu1  ;;  %v790_v26 = vadd.f32 (!%p989_p2), %v990_v19, %v767_v23 }
 0x278   : > { %v738_v61 = vadd.f32 %v1165_v60, %v561_v58  ;;  %v690_v62 = vpop.f32.mrb[9].mxu1  ;;  %807 = vst [vmem:[%s1918_s20 + $0x18] sm:$0xff] (!%p989_p2), %v791_v27 }
 0x279   : > { %v737_v63 = vadd.f32 %v690_v62, %v560_v59  ;;  %v770_v29 = vld [vmem:[#allocation2 + $0x28] sm:$0xff] (!%p989_p2)  ;;  %806 = vst [vmem:[%s1918_s20 + $0x10] sm:$0xff] (!%p989_p2), %v790_v26 }
 0x27a   : > { %754 = vst [vmem:[#allocation2 + $0x48] sm:$0xff] %v738_v61  ;;  %v769_v25 = vld [vmem:[#allocation2 + $0x20] sm:$0xff] (!%p989_p2)  ;;  %v793_v32 = vadd.f32 (!%p989_p2), %v990_v19, %v770_v29 }
 0x27b   : > { %753 = vst [vmem:[#allocation2 + $0x40] sm:$0xff] %v737_v63  ;;  %v1168_v2 = vpop.f32.mrb[10].mxu1  ;;  %v792_v28 = vadd.f32 (!%p989_p2), %v990_v19, %v769_v25 }
 0x27c   : > { %v740_v3 = vadd.f32 %v1168_v2, %v563_v0  ;;  %v700_v4 = vpop.f32.mrb[11].mxu1  ;;  %809 = vst [vmem:[%s1918_s20 + $0x28] sm:$0xff] (!%p989_p2), %v793_v32 }
 0x27d   : > { %v739_v5 = vadd.f32 %v700_v4, %v562_v1  ;;  %v772_v31 = vld [vmem:[#allocation2 + $0x38] sm:$0xff] (!%p989_p2)  ;;  %808 = vst [vmem:[%s1918_s20 + $0x20] sm:$0xff] (!%p989_p2), %v792_v28 }
 0x27e   : > { %756 = vst [vmem:[#allocation2 + $0x58] sm:$0xff] %v740_v3  ;;  %v771_v30 = vld [vmem:[#allocation2 + $0x30] sm:$0xff] (!%p989_p2)  ;;  %v795_v34 = vadd.f32 (!%p989_p2), %v990_v19, %v772_v31 }
 0x27f   : > { %755 = vst [vmem:[#allocation2 + $0x50] sm:$0xff] %v739_v5  ;;  %v1171_v8 = vpop.f32.mrb[12].mxu1  ;;  %v794_v33 = vadd.f32 (!%p989_p2), %v990_v19, %v771_v30 }
 0x280   : > { %v742_v9 = vadd.f32 %v1171_v8, %v565_v6  ;;  %v710_v10 = vpop.f32.mrb[13].mxu1  ;;  %811 = vst [vmem:[%s1918_s20 + $0x38] sm:$0xff] (!%p989_p2), %v795_v34 }
 0x281   : > { %v741_v11 = vadd.f32 %v710_v10, %v564_v7  ;;  %764 = sbr.rel (%p989_p2) target bundleno = 658 (0x292), region = 60  ;;  %v774_v36 = vld [vmem:[#allocation2 + $0x48] sm:$0xff] (!%p989_p2)  ;;  %810 = vst [vmem:[%s1918_s20 + $0x30] sm:$0xff] (!%p989_p2), %v794_v33 }
 0x282   : > { %758 = vst [vmem:[#allocation2 + $0x68] sm:$0xff] %v742_v9  ;;  %v773_v35 = vld [vmem:[#allocation2 + $0x40] sm:$0xff] (!%p989_p2)  ;;  %v797_v39 = vadd.f32 (!%p989_p2), %v990_v19, %v774_v36 }
 0x283   : > { %757 = vst [vmem:[#allocation2 + $0x60] sm:$0xff] %v741_v11  ;;  %v1174_v14 = vpop.f32.mrb[14].mxu1  ;;  %v796_v38 = vadd.f32 (!%p989_p2), %v990_v19, %v773_v35 }
 0x284   : > { %v744_v15 = vadd.f32 %v1174_v14, %v567_v12  ;;  %v720_v16 = vpop.f32.mrb[15].mxu1  ;;  %813 = vst [vmem:[%s1918_s20 + $0x48] sm:$0xff] (!%p989_p2), %v797_v39 }
 0x285   : > { %v743_v17 = vadd.f32 %v720_v16, %v566_v13  ;;  %v776_v41 = vld [vmem:[#allocation2 + $0x58] sm:$0xff] (!%p989_p2)  ;;  %812 = vst [vmem:[%s1918_s20 + $0x40] sm:$0xff] (!%p989_p2), %v796_v38 }
 0x286   : > { %760 = vst [vmem:[#allocation2 + $0x78] sm:$0xff] %v744_v15  ;;  %v775_v37 = vld [vmem:[#allocation2 + $0x50] sm:$0xff] (!%p989_p2)  ;;  %v799_v44 = vadd.f32 (!%p989_p2), %v990_v19, %v776_v41 }
 0x287   : > { %759 = vst [vmem:[#allocation2 + $0x70] sm:$0xff] %v743_v17  ;;  %v798_v40 = vadd.f32 (!%p989_p2), %v990_v19, %v775_v37 }
 0x288   : > { %815 = vst [vmem:[%s1918_s20 + $0x58] sm:$0xff] %v799_v44 }
 0x289   : > { %v778_v43 = vld [vmem:[#allocation2 + $0x68] sm:$0xff]  ;;  %814 = vst [vmem:[%s1918_s20 + $0x50] sm:$0xff] %v798_v40 }
 0x28a   : > { %v777_v42 = vld [vmem:[#allocation2 + $0x60] sm:$0xff]  ;;  %v801_v46 = vadd.f32 %v990_v19, %v778_v43 }
 0x28b   : > { %v800_v45 = vadd.f32 %v990_v19, %v777_v42 }
 0x28c   : > { %817 = vst [vmem:[%s1918_s20 + $0x68] sm:$0xff] %v801_v46 }
 0x28d   : > { %v780_v48 = vld [vmem:[#allocation2 + $0x78] sm:$0xff]  ;;  %816 = vst [vmem:[%s1918_s20 + $0x60] sm:$0xff] %v800_v45 }
 0x28e   : > { %v779_v47 = vld [vmem:[#allocation2 + $0x70] sm:$0xff]  ;;  %v803_v50 = vadd.f32 %v990_v19, %v780_v48 }
 0x28f   : > { %v802_v49 = vadd.f32 %v990_v19, %v779_v47 }
 0x290   : > { %819 = vst [vmem:[%s1918_s20 + $0x78] sm:$0xff] %v803_v50 }
 0x291   : > { %818 = vst [vmem:[%s1918_s20 + $0x70] sm:$0xff] %v802_v49 }
 0x292 PF: > { %s2119_s24 = sld [smem:[#allocation15_spill]]  ;;  %s834_s8 = sshll.u32 %s1918_s20, 4  ;;  %s2001_s8 = int_to_ptr.vmem [resolvable:$true] %s834_s8 }
 0x293   : > { %s2120_s6 = sld [smem:[#allocation23_spill]]  ;;  %s821_s23 = scalar_lea.sflag [#allocation5], %s1890_s1 }
 0x294   : > { %s1447_s4 = scalar_lea.vmem %s2001_s8, 2048  ;;  %p2121_p11 = scmp.ne.s32.totalorder %s2106_s14, 0 }
 0x295   : > { %p1448_p13 = scmp.ne.s32.totalorder %s2001_s8, %s1447_s4  ;;  %s1582_s15 = smov [#allocation9]  }
 0x296   : > { %s1451_s30 = sshll.u32 %s1582_s15, 4  ;;  %s1452_s30 = int_to_ptr.vmem [resolvable:$false] %s1451_s30 }
 0x297   : > { %p1449_p6 = pnand %p1448_p13, %p2121_p11  ;;  %s1453_s13 = scalar_lea.vmem %s1452_s30, 4096 }
 0x298   : > { %s998_s27 = sshll.u32 %s2119_s24, 11  ;;  %p1454_p1 = scmp.lt.s32.totalorder %s2001_s8, %s1452_s30 }
 0x299   : > { %s1998_s7 = scalar_lea.hbm %s2120_s6, %s998_s27  ;;  %p1450_p5 = pneg %p1449_p6 }
 0x29a   : > { %p1455_p0 = scmp.lt.s32.totalorder %s1453_s13, %s1447_s4 }
 0x29c   : > { %p1456_p9 = por %p1455_p0, %p1454_p1 }
 0x29e   : > { %p1457_p12 = pnand %p1456_p9, %p1450_p5 }
 0x2a0   : > { %1460 = shalt.err (!%p1457_p12)
}
 0x2a1   : > { %s1461_s12 = scalar_lea.hbm %s1998_s7, 2048  ;;  %s1465_s17 = scalar_lea.hbm %s2120_s6, 4096 }
 0x2a2   : > { %p1462_p3 = scmp.ne.s32.totalorder %s1998_s7, %s1461_s12  ;;  %p1466_p8 = scmp.lt.u32.totalorder %s1998_s7, %s2120_s6 }
 0x2a3   : > { %p1467_p10 = scmp.lt.u32.totalorder %s1465_s17, %s1461_s12  ;;  %p1469_p13 = scmp.lt.u32.totalorder %s1461_s12, %s1998_s7 }
 0x2a4   : > { %p1463_p4 = pnand %p1462_p3, %p2121_p11 }
 0x2a5   : > { %p1468_p2 = por %p1467_p10, %p1466_p8 }
 0x2a6   : > { %p1464_p7 = pneg %p1463_p4 }
 0x2a7   : > { %p1470_p6 = por %p1469_p13, %p1468_p2 }
 0x2a9   : > { %p1471_p5 = pnand %p1470_p6, %p1464_p7 }
 0x2ab   : > { %1474 = shalt.err (!%p1471_p5)
}
 0x2ac   : > { %s1583_s18 = smov 128   ;;  %s1584_s16 = smov 8  }
 0x2ad   : > { %1245 = dma.vmem_to_hbm [thread:$0]  (%p2121_p11), %s2001_s8, 2048, %s1998_s7, %s821_s23, %s1583_s18, %s1583_s18, %s1584_s16  }
 0x2ae PF: > { %p1262_p1 = scmp.ge.s32.totalorder %s1573_s28, 2  ;;  %s849_s24 = sand.u32 1, %s1545_s21  }
 0x2af   : > { %p2122_p0 = scmp.ne.s32.totalorder %s2108_s5, 0  ;;  %s850_s27 = scalar_lea.sflag [#allocation5], %s849_s24 }
 0x2b1   : > { %p1258_p9 = pnand %p1262_p1, %p2122_p0 }
 0x2b3   : > { %1528 = dma.done.wait (!%p1258_p9), %s850_s27, 2048  }
 0x2b4   : > { %1530 = vsyncadd (!%p1258_p9), %s850_s27, 4294965248  ;;  %s24_s28 = sadd.s32 1, %s1573_s28   ;;  %s2123_s11 = sld [smem:[#allocation13_spill]] }
 0x2b5   : > { %p21_p12 = scmp.ge.s32.totalorder %s24_s28, 6   ;;  %s2124_s20 = sld [smem:[#allocation18_spill]] }
 0x2b6   : > { %s2125_s14 = sld [smem:[#allocation14_spill]]  ;;  %s2126_s23 = sld [smem:[#allocation20_spill]] }
 0x2b7   : > { %s2127_s25 = sld [smem:[#allocation16_spill]]  ;;  %s2128_s1 = sld [smem:[#allocation17_spill]] }
 0x2b8   : > { %s2129_s27 = sld [smem:[#allocation19_spill]]  ;;  %s2130_s18 = smov %s1537_s19 }
 0x2b9   : > { %s2132_s21 = smov %s1549_s22  ;;  %s2134_s24 = smov %s1565_s26 }
 0x2ba   : > { %s2131_s19 = smov %s2123_s11  ;;  %23 = sbr.rel (!%p21_p12) target bundleno = 15 (0xf), region = 120 }
 0x2bc   : > { %s2133_s22 = smov %s2125_s14 }
 0x2bd   : > { %s2135_s26 = smov %s2128_s1 }
 0x2c1   :  { %855 = vsyncpa [#allocation4], 1 }
 0x2c2   :  { %857 = vsyncpa [#allocation4 + $0x1], 1 }
 0x2c3   :  { %858 = vsyncpa [#allocation7], 1 }
 0x2c4   :  { %860 = vsyncpa [#allocation7 + $0x1], 1 }
 0x2c5   :  { %861 = vsyncpa [#allocation5], 1 }
 0x2c6   :  { %863 = vsyncpa [#allocation5 + $0x1], 1 }

</bundles_post_ra>
